<compile_context>
chip_gen: v7x
topology: tpu7x:2x2x1
jax: 0.10.0
libtpu: 0.0.40
codegen_flags: <defaults>
</compile_context>

<pallas_src>
import functools

import jax
import jax.numpy as jnp
from jax.experimental import pallas as pl
from jax.experimental.pallas import tpu as pltpu


def _round_up(x, m):
    return ((x + m - 1) // m) * m


def _mlp_kernel(x_ref, p_ref, o_ref, *, layout):
    """Fused MLP body.

    layout: static tuple of (w_row_off, k_pad, n_pad, b_row_off, apply_act)
    describing where each layer's (padded) weight block and bias row live in
    the packed parameter buffer p_ref.
    """
    h = x_ref[...]
    for w_off, k, n, b_off, act in layout:
        w = p_ref[pl.ds(w_off, k), pl.ds(0, n)]      # (k, n) weight slice
        b = p_ref[pl.ds(b_off, 1), pl.ds(0, n)]      # (1, n) bias row
        h = jnp.dot(h, w, preferred_element_type=jnp.float32) + b
        if act:                                      # tanh on all but last layer
            h = jnp.tanh(h)
    o_ref[...] = h.astype(o_ref.dtype)


def _pack_params(weights, biases, lane=128, sublane=8):
    """Pack all layer weights/biases into one lane-padded f32 buffer.

    Weights are stored as [in, out] (transposed vs. nn.Linear's [out, in]).
    Output dims are zero-padded to a multiple of 128 (lane axis); input dims
    to a multiple of 8 (sublane axis). Zero padding is mathematically inert:
    padded bias lanes give tanh(0)=0 and padded weight rows are zero.
    """
    num_layers = len(weights)
    d_in = [int(w.shape[0]) for w in weights]
    d_out = [int(w.shape[1]) for w in weights]
    pad_out = [_round_up(d, lane) for d in d_out]
    pad_in = [_round_up(d_in[0], sublane)] + pad_out[:-1]
    lane_width = max(pad_out)

    w_off, off = [], 0
    for k in pad_in:
        w_off.append(off)
        off += k
    # Each bias gets its own sublane-aligned row slot (8-row stride).
    b_off = [off + sublane * i for i in range(num_layers)]
    rows = _round_up(off + sublane * num_layers, sublane)

    buf = jnp.zeros((rows, lane_width), jnp.float32)
    for i in range(num_layers):
        buf = buf.at[w_off[i]:w_off[i] + d_in[i], :d_out[i]].set(
            weights[i].astype(jnp.float32))
        buf = buf.at[b_off[i], :d_out[i]].set(biases[i].astype(jnp.float32))

    layout = tuple(
        (w_off[i], pad_in[i], pad_out[i], b_off[i], i < num_layers - 1)
        for i in range(num_layers))
    return buf, layout, pad_in[0], pad_out[-1]


def mlp_forward_pallas(x, weights, biases, *, tile_b=512):
    """Fused MLP forward.

    x:       [B, input_dim]
    weights: list of [d_in_i, d_out_i] arrays
    biases:  list of [d_out_i] arrays
    returns: [B, 1] float32
    """
    assert len(weights) == len(biases)
    B, D = x.shape
    out_cols = int(weights[-1].shape[1])

    buf, layout, in_pad, out_pad = _pack_params(weights, biases)
    kernel = functools.partial(_mlp_kernel, layout=layout)

    B_pad = _round_up(B, 8)
    if B_pad <= tile_b:
        # Small batch: gridless call, whole arrays resident in VMEM.
        x_pad = jnp.zeros((B_pad, in_pad), jnp.float32).at[:B, :D].set(
            x.astype(jnp.float32))
        out = pl.pallas_call(
            kernel,
            out_shape=jax.ShapeDtypeStruct((B_pad, out_pad), jnp.float32),
            in_specs=[
                pl.BlockSpec(memory_space=pltpu.MemorySpace.VMEM),
                pl.BlockSpec(memory_space=pltpu.MemorySpace.VMEM),
            ],
            out_specs=pl.BlockSpec(memory_space=pltpu.MemorySpace.VMEM),
        )(x_pad, buf)
    else:
        # Large batch: tile the batch axis, keep packed params resident.
        # VMEM/step: (tile_b*in_pad + 2*tile_b*out_pad)*4B + params
        #  = 512*(8+256)*4 + ~144KiB  <<  v7x's 32 MiB default scoped limit.
        B_tiled = _round_up(B_pad, tile_b)
        x_pad = jnp.zeros((B_tiled, in_pad), jnp.float32).at[:B, :D].set(
            x.astype(jnp.float32))
        out = pl.pallas_call(
            kernel,
            out_shape=jax.ShapeDtypeStruct((B_tiled, out_pad), jnp.float32),
            grid=(B_tiled // tile_b,),
            in_specs=[
                pl.BlockSpec((tile_b, in_pad), lambda i: (i, 0)),
                pl.BlockSpec(buf.shape, lambda i: (0, 0)),   # resident params
            ],
            out_specs=pl.BlockSpec((tile_b, out_pad), lambda i: (i, 0)),
            compiler_params=pltpu.CompilerParams(
                dimension_semantics=("parallel",),   # v7x: shard across 2 TCs
            ),
        )(x_pad, buf)

    return out[:B, :out_cols]


def init_mlp_params(key, input_dim, hidden_sizes):
    """Deterministic init matching PyTorch nn.Linear default:
    U(-1/sqrt(fan_in), 1/sqrt(fan_in)) for both weight and bias."""
    dims = [input_dim] + list(hidden_sizes) + [1]
    weights, biases = [], []
    for i in range(len(dims) - 1):
        d_in, d_out = dims[i], dims[i + 1]
        key, kw, kb = jax.random.split(key, 3)
        bound = 1.0 / jnp.sqrt(float(d_in))
        w = jax.random.uniform(kw, (d_in, d_out), jnp.float32, -bound, bound)
        b = jax.random.uniform(kb, (d_out,), jnp.float32, -bound, bound)
        weights.append(w)
        biases.append(b)
    return weights, biases


def mlp_forward_ref(x, weights, biases):
    """Pure-JAX reference for correctness check."""
    h = x.astype(jnp.float32)
    n = len(weights)
    for i, (w, b) in enumerate(zip(weights, biases)):
        h = h @ w + b
        if i < n - 1:
            h = jnp.tanh(h)
    return h


if __name__ == "__main__":
    key = jax.random.PRNGKey(0)

    # Shapes consistent with the module: MLP(input_dim=8, hidden_sizes=[32,32])
    # -> output dim 1.
    input_dim = 8
    hidden_sizes = [32, 32]

    key, kx1, kx2, kp = jax.random.split(key, 4)
    weights, biases = init_mlp_params(kp, input_dim, hidden_sizes)

    # 1) Small batch -> gridless single-shot path.
    x_small = jax.random.normal(kx1, (8, input_dim), jnp.float32)
    out_small = jax.block_until_ready(mlp_forward_pallas(x_small, weights, biases))
    ref_small = mlp_forward_ref(x_small, weights, biases)
    assert out_small.shape == (8, 1), out_small.shape
    assert jnp.allclose(out_small, ref_small, atol=1e-5, rtol=1e-5), (
        "small-batch mismatch vs reference")

    # 2) Larger batch -> batch-tiled ("parallel") path.
    x_large = jax.random.normal(kx2, (1000, input_dim), jnp.float32)
    out_large = jax.block_until_ready(mlp_forward_pallas(x_large, weights, biases))
    ref_large = mlp_forward_ref(x_large, weights, biases)
    assert out_large.shape == (1000, 1), out_large.shape
    assert jnp.allclose(out_large, ref_large, atol=1e-5, rtol=1e-5), (
        "large-batch mismatch vs reference")

    print("KERNEL_OK")
</pallas_src>

<mosaic_0001>
module attributes {stable_mosaic.version = 11 : i64} {
  func.func @_mlp_kernel(%arg0: memref<8x8xf32, #tpu.memory_space<vmem>>, %arg1: memref<288x128xf32, #tpu.memory_space<vmem>>, %arg2: memref<8x128xf32, #tpu.memory_space<vmem>>) attributes {dimension_semantics = [], scalar_prefetch = 0 : i64, scratch_operands = 0 : i64, tpu.core_type = #tpu.core_type<tc>} {
    %c0 = arith.constant 0 : index
    %c0_0 = arith.constant 0 : index
    %0 = vector.load %arg0[%c0, %c0_0] : memref<8x8xf32, #tpu.memory_space<vmem>>, vector<8x8xf32>
    %c0_1 = arith.constant 0 : index
    %c0_2 = arith.constant 0 : index
    %1 = vector.load %arg1[%c0_1, %c0_2] : memref<288x128xf32, #tpu.memory_space<vmem>>, vector<8x128xf32>
    %c264 = arith.constant 264 : index
    %c0_3 = arith.constant 0 : index
    %2 = vector.load %arg1[%c264, %c0_3] : memref<288x128xf32, #tpu.memory_space<vmem>>, vector<1x128xf32>
    %cst = arith.constant dense<0.000000e+00> : vector<8x128xf32>
    %3 = tpu.matmul %0, %1, %cst {dimension_numbers = #tpu.dot_dimension_numbers<[1], [0], [0], [1], [0, 0, 1, 1], [], []>} : vector<8x8xf32>, vector<8x128xf32>, vector<8x128xf32> -> vector<8x128xf32>
    %4 = vector.broadcast %2 : vector<1x128xf32> to vector<8x128xf32>
    %5 = arith.addf %3, %4 : vector<8x128xf32>
    %6 = math.tanh %5 : vector<8x128xf32>
    %c8 = arith.constant 8 : index
    %c0_4 = arith.constant 0 : index
    %7 = vector.load %arg1[%c8, %c0_4] : memref<288x128xf32, #tpu.memory_space<vmem>>, vector<128x128xf32>
    %c272 = arith.constant 272 : index
    %c0_5 = arith.constant 0 : index
    %8 = vector.load %arg1[%c272, %c0_5] : memref<288x128xf32, #tpu.memory_space<vmem>>, vector<1x128xf32>
    %cst_6 = arith.constant dense<0.000000e+00> : vector<8x128xf32>
    %9 = tpu.matmul %6, %7, %cst_6 {dimension_numbers = #tpu.dot_dimension_numbers<[1], [0], [0], [1], [0, 0, 1, 1], [], []>} : vector<8x128xf32>, vector<128x128xf32>, vector<8x128xf32> -> vector<8x128xf32>
    %10 = vector.broadcast %8 : vector<1x128xf32> to vector<8x128xf32>
    %11 = arith.addf %9, %10 : vector<8x128xf32>
    %12 = math.tanh %11 : vector<8x128xf32>
    %c136 = arith.constant 136 : index
    %c0_7 = arith.constant 0 : index
    %13 = vector.load %arg1[%c136, %c0_7] : memref<288x128xf32, #tpu.memory_space<vmem>>, vector<128x128xf32>
    %c280 = arith.constant 280 : index
    %c0_8 = arith.constant 0 : index
    %14 = vector.load %arg1[%c280, %c0_8] : memref<288x128xf32, #tpu.memory_space<vmem>>, vector<1x128xf32>
    %cst_9 = arith.constant dense<0.000000e+00> : vector<8x128xf32>
    %15 = tpu.matmul %12, %13, %cst_9 {dimension_numbers = #tpu.dot_dimension_numbers<[1], [0], [0], [1], [0, 0, 1, 1], [], []>} : vector<8x128xf32>, vector<128x128xf32>, vector<8x128xf32> -> vector<8x128xf32>
    %16 = vector.broadcast %14 : vector<1x128xf32> to vector<8x128xf32>
    %17 = arith.addf %15, %16 : vector<8x128xf32>
    %c0_10 = arith.constant 0 : index
    %c0_11 = arith.constant 0 : index
    %18 = vector.load %arg2[%c0_10, %c0_11] : memref<8x128xf32, #tpu.memory_space<vmem>>, vector<8x128xf32>
    tpu.vector_store %arg2[%c0_10, %c0_11], %17 {strides = array<i32>} : memref<8x128xf32, #tpu.memory_space<vmem>>, vector<8x128xf32>,
    return
  }
}

</mosaic_0001>

<bundles_post_ra>
// kernel: tpu_custom_call.1
= control target key start
LH: loop header
LB: loop body
LE: loop exit
PB: predicated region body
PF: predicated region fallthrough
CT: control target
= control target key end

     0   :  { %7 = vsyncpa [#allocation3], 0  ;;  %s652_s0 = inlined_call_operand.hbm [shape: f32[8,8], index: 0, kind: input, shape index: {}]   ;;  %s653_s1 = inlined_call_operand.hbm [shape: f32[288,128], index: 1, kind: input, shape index: {}]   ;;  %s654_s2 = inlined_call_operand.hbm [shape: f32[8,128], index: 2, kind: output, shape index: {}]  }
   0x1   :  { %8 = vsyncpa [#allocation6], 0 }
   0x2   :  { %9 = vsyncpa [#allocation4], 0  ;;  %s567_s9 = smov [#allocation2]   ;;  %s568_s11 = smov [#allocation5]  }
   0x3   :  { %s16_s10 = sshll.u32 %s567_s9, 4  ;;  %s25_s12 = sshll.u32 %s568_s11, 4  ;;  %s17_s10 = int_to_ptr.vmem [resolvable:$true] %s16_s10  ;;  %s590_s12 = int_to_ptr.vmem [resolvable:$true] %s25_s12 }
   0x4   :  { %s495_s15 = scalar_lea.hbm %s652_s0, 128 }
   0x5   :  { %p496_p0 = scmp.ne.s32.totalorder %s652_s0, %s495_s15  ;;  %p499_p1 = scmp.lt.u32.totalorder %s495_s15, %s652_s0 }
   0x7   :  { %p501_p2 = pnand %p499_p1, %p496_p0 }
   0x9   :  { %504 = shalt.err (!%p501_p2)
}
   0xa   :  { %s505_s20 = scalar_lea.vmem %s17_s10, 128  ;;  %p510_p4 = scmp.lt.s32.totalorder %s17_s10, %s17_s10 }
   0xb   :  { %p506_p3 = scmp.ne.s32.totalorder %s17_s10, %s505_s20  ;;  %p511_p5 = scmp.lt.s32.totalorder %s505_s20, %s505_s20 }
   0xd   :  { %p512_p6 = por %p511_p5, %p510_p4 }
   0xf   :  { %p513_p7 = pnand %p512_p6, %p506_p3 }
  0x11   :  { %516 = shalt.err (!%p513_p7)
}
  0x12   :  { %19 = dma.hbm_to_vmem [thread:$0]  %s652_s0, 128, %s17_s10, [#allocation3]  }
  0x13   :  { %s517_s25 = scalar_lea.hbm %s653_s1, 4608 }
  0x14   :  { %p518_p8 = scmp.ne.s32.totalorder %s653_s1, %s517_s25  ;;  %p521_p9 = scmp.lt.u32.totalorder %s517_s25, %s653_s1 }
  0x16   :  { %p523_p10 = pnand %p521_p9, %p518_p8 }
  0x18   :  { %526 = shalt.err (!%p523_p10)
}
  0x19   :  { %s527_s30 = scalar_lea.vmem %s590_s12, 4608  ;;  %p532_p12 = scmp.lt.s32.totalorder %s590_s12, %s590_s12 }
  0x1a   :  { %p528_p11 = scmp.ne.s32.totalorder %s590_s12, %s527_s30  ;;  %p533_p13 = scmp.lt.s32.totalorder %s527_s30, %s527_s30 }
  0x1c   :  { %p534_p0 = por %p533_p13, %p532_p12 }
  0x1e   :  { %p535_p1 = pnand %p534_p0, %p528_p11 }
  0x20   :  { %538 = shalt.err (!%p535_p1)
}
  0x21   :  { %s569_s0 = smov 128   ;;  %s570_s3 = smov 8  }
  0x22   :  { %31 = dma.hbm_to_vmem [thread:$0]  %s653_s1, 4608, %s590_s12, [#allocation6], %s569_s0, %s569_s0, %s570_s3  }
  0x23   :  { %561 = dma.done.wait [#allocation3], 128  }
  0x24   :  { %562 = vsyncadd [#allocation3], 4294967168 }
  0x25   :  { %563 = dma.done.wait [#allocation6], 4608  }
  0x26   :  { %564 = vsyncadd [#allocation6], 4294962688  ;;  %v571_v0 = vmov 0.0   ;;  %vm572_vm0 = vmmov 0   ;;  %v573_v1 = vmov 0.0|0.0   ;;  %vm45_vm1 = vcmask 64512  }
  0x27   :  { %360 = vmatprep.subr.mxu0 %v571_v0  ;;  %362 = vmatprep.mubr.msk.f32.mxu0 %vm572_vm0, %v571_v0  ;;  %v39_v2 = vld [vmem:[#allocation5] sm:$0xff]  ;;  %v38_v3 = vld [vmem:[#allocation2] sm:$0xff]  ;;  %v120_v4 = vld [vmem:[#allocation5 + $0x8] sm:$0xff]  ;;  %s574_s1 = smov [#allocation7]  }
  0x28   :  { %435 = vmatprep.subr.bf16.mxu1 %v573_v1  ;;  %397 = vmatprep.mubr.msk.f32.mxu1 %vm572_vm0, %v571_v0  ;;  %v121_v5 = vld [vmem:[#allocation5 + $0x10] sm:$0xff]  ;;  %v122_v6 = vld [vmem:[#allocation5 + $0x18] sm:$0xff]  ;;  %v123_v7 = vld [vmem:[#allocation5 + $0x20] sm:$0xff]  ;;  %s310_s6 = sshll.u32 %s574_s1, 4  ;;  %s311_s6 = int_to_ptr.vmem [resolvable:$true] %s310_s6 }
  0x29   :  { %361 = vmatpush3.msra.mxu0 %v39_v2  ;;  %v436_v8 = vpack.c.bf16 %v121_v5, %v120_v4  ;;  %v439_v9 = vpack.c.bf16 %v123_v7, %v122_v6  ;;  %v124_v10 = vld [vmem:[#allocation5 + $0x28] sm:$0xff]  ;;  %v125_v11 = vld [vmem:[#allocation5 + $0x30] sm:$0xff]  ;;  %v126_v13 = vld [vmem:[#allocation5 + $0x38] sm:$0xff]  ;;  %s539_s7 = scalar_lea.vmem %s311_s6, 128  ;;  %p544_p3 = scmp.lt.s32.totalorder %s311_s6, %s311_s6 }
  0x2a   :  { %363 = vmatmul.mubr.msk.f32.vlgmr.msra.gmra.mrb[0].mxu0 %vm45_vm1, %v38_v3  ;;  %459 = vmatprep.subr.bf16.mxu0 %v573_v1  ;;  %v442_v12 = vpack.c.bf16 %v125_v11, %v124_v10  ;;  %v127_v14 = vld [vmem:[#allocation5 + $0x40] sm:$0xff]  ;;  %v128_v16 = vld [vmem:[#allocation5 + $0x48] sm:$0xff]  ;;  %v129_v17 = vld [vmem:[#allocation5 + $0x50] sm:$0xff]  ;;  %p540_p2 = scmp.ne.s32.totalorder %s311_s6, %s539_s7  ;;  %p545_p4 = scmp.lt.s32.totalorder %s539_s7, %s539_s7 }
  0x2b   :  { %432 = vmatprep.mubr.msk.f32.mxu0 %vm572_vm0, %v571_v0  ;;  %437 = vmatpush3.bf16.msra.mxu1 %v436_v8  ;;  %v445_v15 = vpack.c.bf16 %v127_v14, %v126_v13  ;;  %v448_v18 = vpack.c.bf16 %v129_v17, %v128_v16  ;;  %v130_v19 = vld [vmem:[#allocation5 + $0x58] sm:$0xff]  ;;  %v131_v20 = vld [vmem:[#allocation5 + $0x60] sm:$0xff]  ;;  %v132_v22 = vld [vmem:[#allocation5 + $0x68] sm:$0xff] }
  0x2c   :  { %438 = vmatprep.subr.bf16.mxu1 %v573_v1  ;;  %v451_v21 = vpack.c.bf16 %v131_v20, %v130_v19  ;;  %v133_v23 = vld [vmem:[#allocation5 + $0x70] sm:$0xff]  ;;  %v134_v25 = vld [vmem:[#allocation5 + $0x78] sm:$0xff]  ;;  %v135_v26 = vld [vmem:[#allocation5 + $0x80] sm:$0xff]  ;;  %p546_p5 = por %p545_p4, %p544_p3 }
  0x2d   :  { %v454_v24 = vpack.c.bf16 %v133_v23, %v132_v22  ;;  %v457_v27 = vpack.c.bf16 %v135_v26, %v134_v25  ;;  %v212_v28 = vld [vmem:[#allocation5 + $0x88] sm:$0xff]  ;;  %v213_v29 = vld [vmem:[#allocation5 + $0x90] sm:$0xff]  ;;  %v214_v30 = vld [vmem:[#allocation5 + $0x98] sm:$0xff] }
  0x2e   :  { %v460_v31 = vpack.c.bf16 %v213_v29, %v212_v28  ;;  %v215_v32 = vld [vmem:[#allocation5 + $0xa0] sm:$0xff]  ;;  %v216_v34 = vld [vmem:[#allocation5 + $0xa8] sm:$0xff]  ;;  %v217_v35 = vld [vmem:[#allocation5 + $0xb0] sm:$0xff]  ;;  %p547_p6 = pnand %p546_p5, %p540_p2 }
  0x2f   :  { %440 = vmatpush3.bf16.msra.mxu1 %v439_v9  ;;  %v463_v33 = vpack.c.bf16 %v215_v32, %v214_v30  ;;  %v466_v36 = vpack.c.bf16 %v217_v35, %v216_v34  ;;  %v218_v37 = vld [vmem:[#allocation5 + $0xb8] sm:$0xff]  ;;  %v219_v38 = vld [vmem:[#allocation5 + $0xc0] sm:$0xff]  ;;  %v220_v40 = vld [vmem:[#allocation5 + $0xc8] sm:$0xff] }
  0x30   :  { %441 = vmatprep.subr.bf16.mxu1 %v573_v1  ;;  %461 = vmatpush3.bf16.msra.mxu0 %v460_v31  ;;  %v469_v39 = vpack.c.bf16 %v219_v38, %v218_v37  ;;  %v221_v41 = vld [vmem:[#allocation5 + $0xd0] sm:$0xff]  ;;  %v320_v43 = vld [vmem:[#allocation5 + $0x108] ss:$0 sm:$0xff]  ;;  %v222_v48 = vld [vmem:[#allocation5 + $0xd8] sm:$0xff] }
  0x31   :  { %462 = vmatprep.subr.bf16.mxu0 %v573_v1  ;;  %v472_v42 = vpack.c.bf16 %v221_v41, %v220_v40  ;;  %v223_v49 = vld [vmem:[#allocation5 + $0xe0] sm:$0xff]  ;;  %v224_v51 = vld [vmem:[#allocation5 + $0xe8] sm:$0xff]  ;;  %v225_v52 = vld [vmem:[#allocation5 + $0xf0] sm:$0xff] }
  0x32   :  { %v475_v50 = vpack.c.bf16 %v223_v49, %v222_v48  ;;  %v478_v53 = vpack.c.bf16 %v225_v52, %v224_v51  ;;  %v226_v54 = vld [vmem:[#allocation5 + $0xf8] sm:$0xff]  ;;  %v227_v55 = vld [vmem:[#allocation5 + $0x100] sm:$0xff]  ;;  %v322_v57 = vld [vmem:[#allocation5 + $0x110] ss:$0 sm:$0xff] }
  0x33   :  { %443 = vmatpush3.bf16.msra.mxu1 %v442_v12  ;;  %v481_v56 = vpack.c.bf16 %v227_v55, %v226_v54  ;;  %v323_v62 = vld [vmem:[#allocation5 + $0x118] ss:$0 sm:$0xff] }
  0x34   :  { %444 = vmatprep.subr.bf16.mxu1 %v573_v1  ;;  %464 = vmatpush3.bf16.msra.mxu0 %v463_v33 }
  0x35   :  { %465 = vmatprep.subr.bf16.mxu0 %v573_v1 }
  0x37   :  { %446 = vmatpush3.bf16.msra.mxu1 %v445_v15 }
  0x38   :  { %447 = vmatprep.subr.bf16.mxu1 %v573_v1  ;;  %467 = vmatpush3.bf16.msra.mxu0 %v466_v36 }
  0x39   :  { %468 = vmatprep.subr.bf16.mxu0 %v573_v1 }
  0x3b   :  { %449 = vmatpush3.bf16.msra.mxu1 %v448_v18 }
  0x3c   :  { %450 = vmatprep.subr.bf16.mxu1 %v573_v1  ;;  %470 = vmatpush3.bf16.msra.mxu0 %v469_v39 }
  0x3d   :  { %471 = vmatprep.subr.bf16.mxu0 %v573_v1 }
  0x3f   :  { %452 = vmatpush3.bf16.msra.mxu1 %v451_v21 }
  0x40   :  { %453 = vmatprep.subr.bf16.mxu1 %v573_v1  ;;  %473 = vmatpush3.bf16.msra.mxu0 %v472_v42 }
  0x41   :  { %474 = vmatprep.subr.bf16.mxu0 %v573_v1 }
  0x43   :  { %455 = vmatpush3.bf16.msra.mxu1 %v454_v24 }
  0x44   :  { %456 = vmatprep.subr.bf16.mxu1 %v573_v1  ;;  %476 = vmatpush3.bf16.msra.mxu0 %v475_v50 }
  0x45   :  { %477 = vmatprep.subr.bf16.mxu0 %v573_v1 }
  0x47   :  { %458 = vmatpush3.bf16.msra.mxu1 %v457_v27 }
  0x48   :  { %479 = vmatpush3.bf16.msra.mxu0 %v478_v53 }
  0x49   :  { %480 = vmatprep.subr.bf16.mxu0 %v573_v1 }
  0x4c   :  { %482 = vmatpush3.bf16.msra.mxu0 %v481_v56 }
  0xfd   :  { %v115_v44 = vpop.f32.mrb[0].mxu0 }
  0xfe   :  { %v116_v45 = vadd.f32 %v320_v43, %v115_v44  ;;  %v364_v46 = vpop.f32.mrb[1].mxu0 }
 0x100   :  { %491 = vtanh.f32 %v116_v45 }
 0x10a   :  { %v492_v47 = vpop.eup %491 }
 0x10b   :  { %398 = vmatmul.mubr.f32.vlgmr.msra.gmra.mrb[0].mxu1 %v492_v47 }
 0x1de   :  { %v207_v58 = vpop.f32.mrb[0].mxu1 }
 0x1df   :  { %v208_v59 = vadd.f32 %v322_v57, %v207_v58  ;;  %v399_v60 = vpop.f32.mrb[1].mxu1 }
 0x1e1   :  { %493 = vtanh.f32 %v208_v59 }
 0x1eb   :  { %v494_v61 = vpop.eup %493 }
 0x1ec   :  { %433 = vmatmul.mubr.f32.vlgmr.msra.gmra.mrb[2].mxu0 %v494_v61 }
 0x2bf   :  { %v299_v63 = vpop.f32.mrb[2].mxu0 }
 0x2c0   :  { %v300_v0 = vadd.f32 %v323_v62, %v299_v63  ;;  %v434_v2 = vpop.f32.mrb[3].mxu0 }
 0x2c2   :  { %303 = vst [vmem:[#allocation7] sm:$0xff] %v300_v0 }
 0x2c3   :  { %550 = shalt.err (!%p547_p6)
}
 0x2c4   :  { %s551_s10 = scalar_lea.hbm %s654_s2, 128 }
 0x2c5   :  { %p552_p7 = scmp.ne.s32.totalorder %s654_s2, %s551_s10  ;;  %p555_p8 = scmp.lt.u32.totalorder %s551_s10, %s654_s2 }
 0x2c7   :  { %p557_p9 = pnand %p555_p8, %p552_p7 }
 0x2c9   :  { %560 = shalt.err (!%p557_p9)
}
 0x2ca   :  { %313 = dma.vmem_to_hbm [thread:$0]  %s311_s6, 128, %s654_s2, [#allocation4]  }
 0x2cb   :  { %565 = dma.done.wait [#allocation4], 128  }
 0x2cc   :  { %566 = vsyncadd [#allocation4], 4294967168 }
 0x2cd   :  { %317 = vsyncpa [#allocation3], 1 }
 0x2ce   :  { %318 = vsyncpa [#allocation6], 1 }
 0x2cf   :  { %319 = vsyncpa [#allocation4], 1 }

</bundles_post_ra>
